<compile_context>
chip_gen: v5e
topology: v5e:2x2
jax: 0.10.0
libtpu: 0.0.40
codegen_flags: <defaults>
</compile_context>

<pallas_src>
import functools

import jax
import jax.numpy as jnp
from jax.experimental import pallas as pl
from jax.experimental.pallas import tpu as pltpu

N_FEATURES = 128     # stand-in for backbone n_features
OUT_FEATURES = 19    # module default out_features


def _fused_kernel(x_ref, wbb_ref, bbb_ref, wh_ref, bh_ref, out_ref, *,
                  hw, cnt, batch):
    # x_ref:   (B*HW, C) bf16       wbb_ref: (C, F) bf16    bbb_ref: (1, F) f32
    # wh_ref:  (F, O_pad) f32  columns [w1 | w2 | zeros]
    # bh_ref:  (1, O_pad) f32  columns [b1 | b2 | zeros]
    # out_ref: (B + G, O_pad) f32
    #   rows 0..B-1 : pooled @ [w1|w2] + [b1|b2]   -> out1 (cols :O), out3 (cols O:2O)
    #   rows B..    : viewed @ [w1|w2] + [b1|b2]   -> out2 (cols O:2O)

    # Backbone stand-in: 1x1 conv (bf16 MXU operands, f32 accum) + bias + ReLU.
    feats = jnp.dot(x_ref[...], wbb_ref[...],
                    preferred_element_type=jnp.float32)            # (B*HW, F)
    feats = jnp.maximum(feats + bbb_ref[...], 0.0)

    # AdaptiveAvgPool2d(1) + Flatten == mean over spatial positions.
    # (B*HW, F) -> (B, HW, F) is a tile-aligned sublane regrouping (HW % 8 == 0);
    # the reduction uses the XLU slot, which is idle here.
    f = feats.shape[-1]
    pooled = jnp.mean(feats.reshape(batch, hw, f), axis=1)          # (B, F) f32

    # MIL branch: pooled.view(-1, cnt, F).max(1)[0], computed entirely in
    # registers from static contiguous per-bag slices (no VMEM scratch,
    # no strided sublane access).
    num_bags = batch // cnt
    bag_max = []
    for g in range(num_bags):
        bag = pooled[g * cnt:(g + 1) * cnt]                         # (cnt, F)
        bag_max.append(jnp.max(bag, axis=0, keepdims=True))
    viewed = jnp.concatenate(bag_max, axis=0)                       # (G, F)

    # Single fused head matmul (dropout is identity in eval mode).
    stacked = jnp.concatenate([pooled, viewed], axis=0)             # (B+G, F)
    out_ref[...] = jnp.dot(stacked, wh_ref[...],
                           preferred_element_type=jnp.float32) + bh_ref[...]


def dual_branch_mil_forward(x_nchw, cnt, params):
    B, C, H, W = x_nchw.shape
    HW = H * W
    F = params["bb_w"].shape[1]
    O = params["w1"].shape[1]
    assert B % cnt == 0
    G = B // cnt

    # Concatenated head output dim, padded to a lane-dense multiple of 128.
    O_cat = 2 * O
    O_pad = ((O_cat + 127) // 128) * 128

    # NCHW -> (B*HW, C) channels-last; bf16 operands for the MXU.
    # TODO(synk): with a real backbone, keep the activation NHWC/bf16 upstream
    # and pass x lane-dense as (C, B*HW) instead of accepting C=4 lanes here.
    x = jnp.transpose(x_nchw, (0, 2, 3, 1)).reshape(B * HW, C)
    x = x.astype(jnp.bfloat16)
    wbb = params["bb_w"].astype(jnp.bfloat16)
    bbb = params["bb_b"].astype(jnp.float32)

    # Fused, zero-padded head weights/bias: [w1 | w2 | 0], [b1 | b2 | 0].
    wh = jnp.pad(
        jnp.concatenate([params["w1"], params["w2"]], axis=1).astype(jnp.float32),
        ((0, 0), (0, O_pad - O_cat)))
    bh = jnp.pad(
        jnp.concatenate([params["b1"], params["b2"]], axis=1).astype(jnp.float32),
        ((0, 0), (0, O_pad - O_cat)))

    kernel = functools.partial(_fused_kernel, hw=HW, cnt=cnt, batch=B)
    out = pl.pallas_call(
        kernel,
        out_shape=jax.ShapeDtypeStruct((B + G, O_pad), jnp.float32),
        grid=(1,),
        in_specs=[
            pl.BlockSpec((B * HW, C), lambda i: (0, 0)),
            pl.BlockSpec((C, F), lambda i: (0, 0)),
            pl.BlockSpec((1, F), lambda i: (0, 0)),
            pl.BlockSpec((F, O_pad), lambda i: (0, 0)),
            pl.BlockSpec((1, O_pad), lambda i: (0, 0)),
        ],
        out_specs=pl.BlockSpec((B + G, O_pad), lambda i: (0, 0)),
        compiler_params=pltpu.CompilerParams(
            dimension_semantics=("arbitrary",)),
    )(x, wbb, bbb, wh, bh)

    out1 = out[:B, :O]           # pooled @ w1 + b1
    out3 = out[:B, O:O_cat]      # pooled @ w2 + b2
    out2 = out[B:, O:O_cat]      # viewed @ w2 + b2
    return out1, out2, out3


def _reference_forward(x_nchw, cnt, params):
    # Pure-JAX reference with the SAME bf16 rounding of the backbone matmul
    # operands as the kernel (f32 accumulation / epilogue), so the comparison
    # is apples-to-apples.
    B, C, H, W = x_nchw.shape
    x = jnp.transpose(x_nchw, (0, 2, 3, 1)).reshape(B, H * W, C)
    x = x.astype(jnp.bfloat16)
    wbb = params["bb_w"].astype(jnp.bfloat16)
    feats = jnp.einsum("bpc,cf->bpf", x, wbb,
                       preferred_element_type=jnp.float32)
    feats = jnp.maximum(feats + params["bb_b"][None].astype(jnp.float32), 0.0)
    pooled = jnp.mean(feats, axis=1)                               # (B, F)
    viewed = jnp.max(pooled.reshape(B // cnt, cnt, -1), axis=1)    # (G, F)
    o1 = pooled @ params["w1"] + params["b1"]
    o2 = viewed @ params["w2"] + params["b2"]
    o3 = pooled @ params["w2"] + params["b2"]
    return o1, o2, o3


def init_params(key):
    kb, k1, k2, k3, k4, k5 = jax.random.split(key, 6)
    C, F, O = 4, N_FEATURES, OUT_FEATURES
    return {
        # backbone stand-in (1x1 conv): weight (C, F), bias (1, F)
        "bb_w": jax.random.normal(kb, (C, F), jnp.float32) * 0.1,
        "bb_b": jax.random.normal(k1, (1, F), jnp.float32) * 0.01,
        # last_linear: PyTorch weight is (O, F); stored transposed (F, O)
        "w1": jax.random.normal(k2, (F, O), jnp.float32) * (1.0 / F) ** 0.5,
        "b1": jax.random.normal(k3, (1, O), jnp.float32) * 0.01,
        # last_linear2
        "w2": jax.random.normal(k4, (F, O), jnp.float32) * (1.0 / F) ** 0.5,
        "b2": jax.random.normal(k5, (1, O), jnp.float32) * 0.01,
    }


if __name__ == "__main__":
    key = jax.random.PRNGKey(0)
    kx, kp = jax.random.split(key)

    B, C, H, W = 4, 4, 16, 16
    cnt = 2
    x = jax.random.normal(kx, (B, C, H, W), jnp.float32)
    params = init_params(kp)

    out1, out2, out3 = dual_branch_mil_forward(x, cnt, params)
    jax.block_until_ready((out1, out2, out3))

    r1, r2, r3 = _reference_forward(x, cnt, params)
    assert out1.shape == (B, OUT_FEATURES)
    assert out2.shape == (B // cnt, OUT_FEATURES)
    assert out3.shape == (B, OUT_FEATURES)
    assert jnp.allclose(out1, r1, atol=1e-3, rtol=1e-3)
    assert jnp.allclose(out2, r2, atol=1e-3, rtol=1e-3)
    assert jnp.allclose(out3, r3, atol=1e-3, rtol=1e-3)

    print("KERNEL_OK")
</pallas_src>

<mosaic_0001>
module attributes {stable_mosaic.version = 11 : i64} {
  func.func @_fused_kernel(%arg0: i32, %arg1: memref<1024x4xbf16, #tpu.memory_space<vmem>>, %arg2: memref<4x128xbf16, #tpu.memory_space<vmem>>, %arg3: memref<1x128xf32, #tpu.memory_space<vmem>>, %arg4: memref<128x128xf32, #tpu.memory_space<vmem>>, %arg5: memref<1x128xf32, #tpu.memory_space<vmem>>, %arg6: memref<6x128xf32, #tpu.memory_space<vmem>>) attributes {dimension_semantics = [#tpu.dimension_semantics<arbitrary>], iteration_bounds = array<i64: 1>, scalar_prefetch = 0 : i64, scratch_operands = 0 : i64, tpu.core_type = #tpu.core_type<tc>, window_params = [{pipeline_mode = #tpu.pipeline_mode<synchronous>, transform_indices = @transform_0, window_bounds = array<i64: 1024, 4>}, {pipeline_mode = #tpu.pipeline_mode<synchronous>, transform_indices = @transform_1, window_bounds = array<i64: 4, 128>}, {pipeline_mode = #tpu.pipeline_mode<synchronous>, transform_indices = @transform_2, window_bounds = array<i64: 1, 128>}, {pipeline_mode = #tpu.pipeline_mode<synchronous>, transform_indices = @transform_3, window_bounds = array<i64: 128, 128>}, {pipeline_mode = #tpu.pipeline_mode<synchronous>, transform_indices = @transform_4, window_bounds = array<i64: 1, 128>}, {pipeline_mode = #tpu.pipeline_mode<synchronous>, transform_indices = @transform_5, window_bounds = array<i64: 6, 128>}]} {
    %c0 = arith.constant 0 : index
    %c0_0 = arith.constant 0 : index
    %0 = vector.load %arg1[%c0, %c0_0] : memref<1024x4xbf16, #tpu.memory_space<vmem>>, vector<1024x4xbf16>
    %c0_1 = arith.constant 0 : index
    %c0_2 = arith.constant 0 : index
    %1 = vector.load %arg2[%c0_1, %c0_2] : memref<4x128xbf16, #tpu.memory_space<vmem>>, vector<4x128xbf16>
    %cst = arith.constant dense<0.000000e+00> : vector<1024x128xf32>
    %2 = tpu.matmul %0, %1, %cst {dimension_numbers = #tpu.dot_dimension_numbers<[1], [0], [0], [1], [0, 0, 1, 1], [], []>} : vector<1024x4xbf16>, vector<4x128xbf16>, vector<1024x128xf32> -> vector<1024x128xf32>
    %c0_3 = arith.constant 0 : index
    %c0_4 = arith.constant 0 : index
    %3 = vector.load %arg3[%c0_3, %c0_4] : memref<1x128xf32, #tpu.memory_space<vmem>>, vector<1x128xf32>
    %4 = vector.broadcast %3 : vector<1x128xf32> to vector<1024x128xf32>
    %5 = arith.addf %2, %4 : vector<1024x128xf32>
    %cst_5 = arith.constant 0.000000e+00 : f32
    %6 = vector.broadcast %cst_5 : f32 to vector<1024x128xf32>
    %7 = arith.maximumf %5, %6 : vector<1024x128xf32>
    %8 = vector.shape_cast %7 : vector<1024x128xf32> to vector<4x256x128xf32>
    %cst_6 = arith.constant dense<0.000000e+00> : vector<4x128xf32>
    %9 = vector.multi_reduction <add>, %8, %cst_6 [1] : vector<4x256x128xf32> to vector<4x128xf32>
    %cst_7 = arith.constant 2.560000e+02 : f32
    %10 = vector.broadcast %cst_7 : f32 to vector<4x128xf32>
    %11 = arith.divf %9, %10 : vector<4x128xf32>
    %12 = vector.extract_strided_slice %11 {offsets = [0, 0], sizes = [2, 128], strides = [1, 1]} : vector<4x128xf32> to vector<2x128xf32>
    %cst_8 = arith.constant dense<0xFF800000> : vector<128xf32>
    %13 = vector.multi_reduction <maximumf>, %12, %cst_8 [0] : vector<2x128xf32> to vector<128xf32>
    %14 = vector.shape_cast %13 : vector<128xf32> to vector<1x128xf32>
    %15 = vector.extract_strided_slice %11 {offsets = [2, 0], sizes = [2, 128], strides = [1, 1]} : vector<4x128xf32> to vector<2x128xf32>
    %cst_9 = arith.constant dense<0xFF800000> : vector<128xf32>
    %16 = vector.multi_reduction <maximumf>, %15, %cst_9 [0] : vector<2x128xf32> to vector<128xf32>
    %17 = vector.shape_cast %16 : vector<128xf32> to vector<1x128xf32>
    %18 = tpu.concatenate %14, %17 in 0 : vector<1x128xf32>, vector<1x128xf32> -> vector<2x128xf32>
    %19 = tpu.concatenate %11, %18 in 0 : vector<4x128xf32>, vector<2x128xf32> -> vector<6x128xf32>
    %c0_10 = arith.constant 0 : index
    %c0_11 = arith.constant 0 : index
    %20 = vector.load %arg4[%c0_10, %c0_11] : memref<128x128xf32, #tpu.memory_space<vmem>>, vector<128x128xf32>
    %cst_12 = arith.constant dense<0.000000e+00> : vector<6x128xf32>
    %21 = tpu.matmul %19, %20, %cst_12 {dimension_numbers = #tpu.dot_dimension_numbers<[1], [0], [0], [1], [0, 0, 1, 1], [], []>} : vector<6x128xf32>, vector<128x128xf32>, vector<6x128xf32> -> vector<6x128xf32>
    %c0_13 = arith.constant 0 : index
    %c0_14 = arith.constant 0 : index
    %22 = vector.load %arg5[%c0_13, %c0_14] : memref<1x128xf32, #tpu.memory_space<vmem>>, vector<1x128xf32>
    %23 = vector.broadcast %22 : vector<1x128xf32> to vector<6x128xf32>
    %24 = arith.addf %21, %23 : vector<6x128xf32>
    %c0_15 = arith.constant 0 : index
    %c0_16 = arith.constant 0 : index
    %25 = vector.load %arg6[%c0_15, %c0_16] : memref<6x128xf32, #tpu.memory_space<vmem>>, vector<6x128xf32>
    tpu.vector_store %arg6[%c0_15, %c0_16], %24 {strides = array<i32>} : memref<6x128xf32, #tpu.memory_space<vmem>>, vector<6x128xf32>,
    return
  }
  func.func @transform_0(%arg0: i32) -> (i32, i32) {
    %c0_i32 = arith.constant 0 : i32
    %c0_i32_0 = arith.constant 0 : i32
    %c0_i32_1 = arith.constant 0 : i32
    return %c0_i32, %c0_i32_0 : i32, i32
  }
  func.func @transform_1(%arg0: i32) -> (i32, i32) {
    %c0_i32 = arith.constant 0 : i32
    %c0_i32_0 = arith.constant 0 : i32
    %c0_i32_1 = arith.constant 0 : i32
    return %c0_i32, %c0_i32_0 : i32, i32
  }
  func.func @transform_2(%arg0: i32) -> (i32, i32) {
    %c0_i32 = arith.constant 0 : i32
    %c0_i32_0 = arith.constant 0 : i32
    %c0_i32_1 = arith.constant 0 : i32
    return %c0_i32, %c0_i32_0 : i32, i32
  }
  func.func @transform_3(%arg0: i32) -> (i32, i32) {
    %c0_i32 = arith.constant 0 : i32
    %c0_i32_0 = arith.constant 0 : i32
    %c0_i32_1 = arith.constant 0 : i32
    return %c0_i32, %c0_i32_0 : i32, i32
  }
  func.func @transform_4(%arg0: i32) -> (i32, i32) {
    %c0_i32 = arith.constant 0 : i32
    %c0_i32_0 = arith.constant 0 : i32
    %c0_i32_1 = arith.constant 0 : i32
    return %c0_i32, %c0_i32_0 : i32, i32
  }
  func.func @transform_5(%arg0: i32) -> (i32, i32) {
    %c0_i32 = arith.constant 0 : i32
    %c0_i32_0 = arith.constant 0 : i32
    %c0_i32_1 = arith.constant 0 : i32
    return %c0_i32, %c0_i32_0 : i32, i32
  }
}

</mosaic_0001>

<bundles_post_ra>
// kernel: tpu_custom_call.1
= control target key start
LH: loop header
LB: loop body
LE: loop exit
PB: predicated region body
PF: predicated region fallthrough
CT: control target
= control target key end

     0   :  { %vm668_vm0 = vcmask 1041408   ;;  %vm475_vm1 = vcmask 31744   ;;  %s2389_s0 = inlined_call_operand.vmem [shape: bf16[1024,4], index: 0, kind: input, shape index: {}]   ;;  %s2390_s1 = inlined_call_operand.vmem [shape: bf16[4,128], index: 1, kind: input, shape index: {}]   ;;  %s2391_s2 = inlined_call_operand.vmem [shape: f32[1,128], index: 2, kind: input, shape index: {}]   ;;  %s2392_s3 = inlined_call_operand.vmem [shape: f32[128,128], index: 3, kind: input, shape index: {}]   ;;  %s2393_s4 = inlined_call_operand.vmem [shape: f32[1,128], index: 4, kind: input, shape index: {}]   ;;  %s2394_s5 = inlined_call_operand.hbm [shape: f32[6,128], index: 5, kind: output, shape index: {}]  }
   0x1   :  { %v150_v0 = vld [vmem:[%s2390_s1] sm:$0x3]  ;;  %v1715_v3 = vld [vmem:[%s2389_s0 + $0xf0] sm:$0xff]  ;;  %v1732_v4 = vld [vmem:[%s2389_s0 + $0x178] sm:$0xff] }
   0x2   :  { %v670_v1 = vsel %vm668_vm0, %v150_v0, 0  ;;  %v1685_v2 = vld [vmem:[%s2389_s0] sm:$0xff] }
   0x3   :  { %679 = vmatpush.bf16.msra.mxu0 %v670_v1  ;;  %1750 = vmatpush.bf16.msra.mxu2 %v670_v1 }
   0x4   :  { %1751 = vmatpush.bf16.msra.mxu3 %v670_v1  ;;  %1749 = vmatpush.bf16.msra.mxu1 %v670_v1 }
   0x5   :  { %10 = vsyncpa [#allocation3], 0  ;;  %v1686_v5 = vld [vmem:[%s2389_s0 + $0x8] sm:$0xff]  ;;  %v1716_v6 = vld [vmem:[%s2389_s0 + $0xf8] sm:$0xff]  ;;  %vm1296_vm3 = vcmask 1041409   ;;  %vm1298_vm4 = vcmask 1042434  }
   0x6   :  { %1621 = vmatmul.msk.bf16.vlgmr.msra.gmra.mxu0 %vm475_vm1, %v1685_v2  ;;  %1651 = vmatmul.msk.bf16.vlgmr.msra.gmra.mxu2 %vm475_vm1, %v1715_v3  ;;  %v1733_v7 = vld [vmem:[%s2389_s0 + $0x180] sm:$0xff]  ;;  %v1687_v8 = vld [vmem:[%s2389_s0 + $0x10] sm:$0xff]  ;;  %v1734_v10 = vld [vmem:[%s2389_s0 + $0x188] sm:$0xff]  ;;  %vm1290_vm5 = vcmask 1040384   ;;  %vm1300_vm6 = vcmask 1043459   ;;  %vm1306_vm7 = vcmask 1043456  }
   0x7   :  { %1668 = vmatmul.msk.bf16.vlgmr.msra.gmra.mxu3 %vm475_vm1, %v1732_v4  ;;  %v1717_v9 = vld [vmem:[%s2389_s0 + $0x100] sm:$0xff]  ;;  %v1688_v11 = vld [vmem:[%s2389_s0 + $0x18] sm:$0xff]  ;;  %v1718_v12 = vld [vmem:[%s2389_s0 + $0x108] sm:$0xff]  ;;  %s1786_s1 = smov [#allocation2]   ;;  %s1356_s29 = sshll.u32 %s2394_s5, 4  ;;  %s1357_s29 = int_to_ptr.hbm [resolvable:$true] %s1356_s29 }
   0x8   :  { %v1735_v13 = vld [vmem:[%s2389_s0 + $0x190] sm:$0xff]  ;;  %v1689_v14 = vld [vmem:[%s2389_s0 + $0x20] sm:$0xff]  ;;  %v1736_v16 = vld [vmem:[%s2389_s0 + $0x198] sm:$0xff]  ;;  %s1354_s26 = sshll.u32 %s1786_s1, 4  ;;  %s1355_s26 = int_to_ptr.vmem [resolvable:$true] %s1354_s26 }
   0x9   :  { %v1719_v15 = vld [vmem:[%s2389_s0 + $0x110] sm:$0xff]  ;;  %v1702_v17 = vld [vmem:[%s2389_s0 + $0x88] sm:$0xff]  ;;  %v1720_v19 = vld [vmem:[%s2389_s0 + $0x118] sm:$0xff] }
   0xa   :  { %1638 = vmatmul.msk.bf16.vlgmr.msra.gmra.mxu1 %vm475_vm1, %v1702_v17  ;;  %v1690_v18 = vld [vmem:[%s2389_s0 + $0x28] sm:$0xff]  ;;  %v1737_v20 = vld [vmem:[%s2389_s0 + $0x1a0] sm:$0xff]  ;;  %v1703_v21 = vld [vmem:[%s2389_s0 + $0x90] sm:$0xff] }
   0xb   :  { %v1691_v22 = vld [vmem:[%s2389_s0 + $0x30] sm:$0xff]  ;;  %v1721_v23 = vld [vmem:[%s2389_s0 + $0x120] sm:$0xff]  ;;  %v1738_v24 = vld [vmem:[%s2389_s0 + $0x1a8] sm:$0xff] }
   0xc   :  { %v1704_v25 = vld [vmem:[%s2389_s0 + $0x98] sm:$0xff]  ;;  %v1722_v27 = vld [vmem:[%s2389_s0 + $0x128] sm:$0xff]  ;;  %v1739_v28 = vld [vmem:[%s2389_s0 + $0x1b0] sm:$0xff] }
   0xd   :  { %v1692_v26 = vld [vmem:[%s2389_s0 + $0x38] sm:$0xff]  ;;  %v1705_v29 = vld [vmem:[%s2389_s0 + $0xa0] sm:$0xff]  ;;  %v1723_v31 = vld [vmem:[%s2389_s0 + $0x130] sm:$0xff] }
   0xe   :  { %v1693_v30 = vld [vmem:[%s2389_s0 + $0x40] sm:$0xff]  ;;  %v1740_v33 = vld [vmem:[%s2389_s0 + $0x1b8] sm:$0xff]  ;;  %v1706_v44 = vld [vmem:[%s2389_s0 + $0xa8] sm:$0xff] }
   0xf   :  { %v1944_v34 = vld [vmem:[%s2391_s2] ss:$0 sm:$0xff]  ;;  %v1694_v46 = vld [vmem:[%s2389_s0 + $0x48] sm:$0xff]  ;;  %v1724_v47 = vld [vmem:[%s2389_s0 + $0x138] sm:$0xff] }
  0x10   :  { %v1741_v49 = vld [vmem:[%s2389_s0 + $0x1c0] sm:$0xff]  ;;  %v1707_v61 = vld [vmem:[%s2389_s0 + $0xb0] sm:$0xff]  ;;  %v1742_v4 = vld [vmem:[%s2389_s0 + $0x1c8] sm:$0xff] }
  0x11   :  { %v1695_v63 = vld [vmem:[%s2389_s0 + $0x50] sm:$0xff]  ;;  %v1725_v0 = vld [vmem:[%s2389_s0 + $0x140] sm:$0xff] }
  0x16   :  { %1622 = vmatmul.msk.bf16.gmra.mxu0 %vm475_vm1, %v1686_v5  ;;  %1652 = vmatmul.msk.bf16.gmra.mxu2 %vm475_vm1, %v1716_v6 }
  0x17   :  { %1669 = vmatmul.msk.bf16.gmra.mxu3 %vm475_vm1, %v1733_v7 }
  0x1a   :  { %1639 = vmatmul.msk.bf16.gmra.mxu1 %vm475_vm1, %v1703_v21  ;;  %v1708_v21 = vld [vmem:[%s2389_s0 + $0xb8] sm:$0xff] }
  0x26   :  { %1623 = vmatmul.msk.bf16.gmra.mxu0 %vm475_vm1, %v1687_v8  ;;  %1653 = vmatmul.msk.bf16.gmra.mxu2 %vm475_vm1, %v1717_v9 }
  0x27   :  { %1670 = vmatmul.msk.bf16.gmra.mxu3 %vm475_vm1, %v1734_v10 }
  0x2a   :  { %1640 = vmatmul.msk.bf16.gmra.mxu1 %vm475_vm1, %v1704_v25  ;;  %v1696_v25 = vld [vmem:[%s2389_s0 + $0x58] sm:$0xff] }
  0x36   :  { %1624 = vmatmul.msk.bf16.gmra.mxu0 %vm475_vm1, %v1688_v11  ;;  %1654 = vmatmul.msk.bf16.gmra.mxu2 %vm475_vm1, %v1718_v12 }
  0x37   :  { %1671 = vmatmul.msk.bf16.gmra.mxu3 %vm475_vm1, %v1735_v13 }
  0x3a   :  { %1641 = vmatmul.msk.bf16.gmra.mxu1 %vm475_vm1, %v1705_v29  ;;  %v1743_v29 = vld [vmem:[%s2389_s0 + $0x1d0] sm:$0xff] }
  0x46   :  { %1625 = vmatmul.msk.bf16.gmra.mxu0 %vm475_vm1, %v1689_v14  ;;  %1655 = vmatmul.msk.bf16.gmra.mxu2 %vm475_vm1, %v1719_v15 }
  0x47   :  { %1672 = vmatmul.msk.bf16.gmra.mxu3 %vm475_vm1, %v1736_v16 }
  0x4a   :  { %1642 = vmatmul.msk.bf16.gmra.mxu1 %vm475_vm1, %v1706_v44 }
  0x56   :  { %1626 = vmatmul.msk.bf16.gmra.mxu0 %vm475_vm1, %v1690_v18  ;;  %1656 = vmatmul.msk.bf16.gmra.mxu2 %vm475_vm1, %v1720_v19 }
  0x57   :  { %1673 = vmatmul.msk.bf16.gmra.mxu3 %vm475_vm1, %v1737_v20 }
  0x5a   :  { %1643 = vmatmul.msk.bf16.gmra.mxu1 %vm475_vm1, %v1707_v61  ;;  %v1727_v61 = vld [vmem:[%s2389_s0 + $0x150] sm:$0xff] }
  0x66   :  { %1627 = vmatmul.msk.bf16.gmra.mxu0 %vm475_vm1, %v1691_v22  ;;  %1657 = vmatmul.msk.bf16.gmra.mxu2 %vm475_vm1, %v1721_v23 }
  0x67   :  { %1674 = vmatmul.msk.bf16.gmra.mxu3 %vm475_vm1, %v1738_v24 }
  0x6a   :  { %1644 = vmatmul.msk.bf16.gmra.mxu1 %vm475_vm1, %v1708_v21 }
  0x76   :  { %1628 = vmatmul.msk.bf16.gmra.mxu0 %vm475_vm1, %v1692_v26  ;;  %1658 = vmatmul.msk.bf16.gmra.mxu2 %vm475_vm1, %v1722_v27  ;;  %v1726_v26 = vld [vmem:[%s2389_s0 + $0x148] sm:$0xff] }
  0x77   :  { %1675 = vmatmul.msk.bf16.gmra.mxu3 %vm475_vm1, %v1739_v28 }
  0x83   :  { %v681_v32 = vpop.f32.mrf.mxu0 }
  0x84   :  { %v682_v36 = vadd.f32 %v1944_v34, %v681_v32 }
  0x86   :  { %1629 = vmatmul.msk.bf16.gmra.mxu0 %vm475_vm1, %v1693_v30  ;;  %1659 = vmatmul.msk.bf16.gmra.mxu2 %vm475_vm1, %v1723_v31  ;;  %v1001_v40 = vmax.f32 %v682_v36, 0.0 }
  0x87   :  { %1676 = vmatmul.msk.bf16.gmra.mxu3 %vm475_vm1, %v1740_v33 }
  0x89   :  { %v1949_v35 = vpop.f32.mrf.mxu2 }
  0x8a   :  { %v1952_v37 = vpop.f32.mrf.mxu3 }
  0x8b   :  { %v683_v38 = vpop.f32.mrf.mxu0 }
  0x8c   :  { %v684_v39 = vadd.f32 %v1944_v34, %v683_v38 }
  0x8e   :  { %v1002_v41 = vmax.f32 %v684_v39, 0.0 }
  0x90   :  { %v1129_v42 = vadd.f32 %v1002_v41, %v1001_v40 }
  0x91   :  { %v1955_v43 = vpop.f32.mrf.mxu2 }
  0x92   :  { %v1960_v45 = vpop.f32.mrf.mxu3 }
  0x93   :  { %v686_v48 = vpop.f32.mrf.mxu0 }
  0x94   :  { %v687_v50 = vadd.f32 %v1944_v34, %v686_v48 }
  0x96   :  { %v1003_v51 = vmax.f32 %v687_v50, 0.0  ;;  %1630 = vmatmul.msk.bf16.gmra.mxu0 %vm475_vm1, %v1694_v46  ;;  %1660 = vmatmul.msk.bf16.gmra.mxu2 %vm475_vm1, %v1724_v47 }
  0x97   :  { %1677 = vmatmul.msk.bf16.gmra.mxu3 %vm475_vm1, %v1741_v49 }
  0x98   :  { %v1130_v52 = vadd.f32 %v1129_v42, %v1003_v51 }
  0x99   :  { %v1976_v53 = vpop.f32.mrf.mxu2 }
  0x9a   :  { %v921_v54 = vpop.f32.mrf.mxu3 }
  0x9b   :  { %v688_v55 = vpop.f32.mrf.mxu0  ;;  %v922_v58 = vadd.f32 %v1944_v34, %v921_v54 }
  0x9c   :  { %v689_v56 = vadd.f32 %v1944_v34, %v688_v55 }
  0x9d   :  { %v1097_v1 = vmax.f32 %v922_v58, 0.0 }
  0x9e   :  { %v1004_v57 = vmax.f32 %v689_v56, 0.0  ;;  %v1709_v56 = vld [vmem:[%s2389_s0 + $0xc0] sm:$0xff] }
  0x9f   :  { %1645 = vmatmul.msk.bf16.gmra.mxu1 %vm475_vm1, %v1709_v56 }
  0xa0   :  { %v1131_v59 = vadd.f32 %v1130_v52, %v1004_v57 }
  0xa1   :  { %v1980_v60 = vpop.f32.mrf.mxu2 }
  0xa2   :  { %v923_v62 = vpop.f32.mrf.mxu3 }
  0xa3   :  { %v924_v2 = vadd.f32 %v1944_v34, %v923_v62  ;;  %v691_v3 = vpop.f32.mrf.mxu0 }
  0xa4   :  { %v692_v5 = vadd.f32 %v1944_v34, %v691_v3 }
  0xa5   :  { %v1098_v6 = vmax.f32 %v924_v2, 0.0 }
  0xa6   :  { %v1005_v7 = vmax.f32 %v692_v5, 0.0  ;;  %1631 = vmatmul.msk.bf16.gmra.mxu0 %vm475_vm1, %v1695_v63  ;;  %1661 = vmatmul.msk.bf16.gmra.mxu2 %vm475_vm1, %v1725_v0  ;;  %v1744_v0 = vld [vmem:[%s2389_s0 + $0x1d8] sm:$0xff] }
  0xa7   :  { %v1240_v8 = vadd.f32 %v1098_v6, %v1097_v1  ;;  %1678 = vmatmul.msk.bf16.gmra.mxu3 %vm475_vm1, %v1742_v4 }
  0xa8   :  { %v1132_v9 = vadd.f32 %v1131_v59, %v1005_v7  ;;  %v1697_v59 = vld [vmem:[%s2389_s0 + $0x60] sm:$0xff] }
  0xa9   :  { %v841_v10 = vpop.f32.mrf.mxu2 }
  0xaa   :  { %v926_v11 = vpop.f32.mrf.mxu3  ;;  %v842_v16 = vadd.f32 %v1944_v34, %v841_v10 }
  0xab   :  { %v927_v12 = vadd.f32 %v1944_v34, %v926_v11  ;;  %v693_v13 = vpop.f32.mrf.mxu0 }
  0xac   :  { %v694_v14 = vadd.f32 %v1944_v34, %v693_v13  ;;  %v1065_v22 = vmax.f32 %v842_v16, 0.0 }
  0xad   :  { %v1099_v15 = vmax.f32 %v927_v12, 0.0 }
  0xae   :  { %v1006_v17 = vmax.f32 %v694_v14, 0.0 }
  0xaf   :  { %v1241_v18 = vadd.f32 %v1240_v8, %v1099_v15 }
  0xb0   :  { %v1133_v19 = vadd.f32 %v1132_v9, %v1006_v17 }
  0xb1   :  { %v843_v20 = vpop.f32.mrf.mxu2 }
  0xb2   :  { %v844_v23 = vadd.f32 %v1944_v34, %v843_v20  ;;  %v928_v24 = vpop.f32.mrf.mxu3  ;;  %v2047_v20 = vpop.f32.mrf.mxu1 }
  0xb3   :  { %v929_v27 = vadd.f32 %v1944_v34, %v928_v24  ;;  %v696_v28 = vpop.f32.mrf.mxu0 }
  0xb4   :  { %v1066_v30 = vmax.f32 %v844_v23, 0.0  ;;  %v697_v31 = vadd.f32 %v1944_v34, %v696_v28 }
  0xb5   :  { %v1100_v32 = vmax.f32 %v929_v27, 0.0 }
  0xb6   :  { %v1203_v33 = vadd.f32 %v1066_v30, %v1065_v22  ;;  %v1007_v36 = vmax.f32 %v697_v31, 0.0  ;;  %1632 = vmatmul.msk.bf16.gmra.mxu0 %vm475_vm1, %v1696_v25  ;;  %1662 = vmatmul.msk.bf16.gmra.mxu2 %vm475_vm1, %v1726_v26  ;;  %v1710_v22 = vld [vmem:[%s2389_s0 + $0xc8] sm:$0xff]  ;;  %v1728_v26 = vld [vmem:[%s2389_s0 + $0x158] sm:$0xff] }
  0xb7   :  { %v1242_v38 = vadd.f32 %v1241_v18, %v1100_v32  ;;  %1679 = vmatmul.msk.bf16.gmra.mxu3 %vm475_vm1, %v1743_v29  ;;  %v1698_v25 = vld [vmem:[%s2389_s0 + $0x68] sm:$0xff]  ;;  %v1745_v29 = vld [vmem:[%s2389_s0 + $0x1e0] sm:$0xff]  ;;  %1646 = vmatmul.msk.bf16.gmra.mxu1 %vm475_vm1, %v1710_v22 }
  0xb8   :  { %v1134_v39 = vadd.f32 %v1133_v19, %v1007_v36 }
  0xb9   :  { %v846_v40 = vpop.f32.mrf.mxu2 }
  0xba   :  { %v847_v41 = vadd.f32 %v1944_v34, %v846_v40  ;;  %v931_v42 = vpop.f32.mrf.mxu3  ;;  %v2068_v40 = vpop.f32.mrf.mxu1 }
  0xbb   :  { %v932_v44 = vadd.f32 %v1944_v34, %v931_v42  ;;  %v698_v46 = vpop.f32.mrf.mxu0 }
  0xbc   :  { %v1067_v47 = vmax.f32 %v847_v41, 0.0  ;;  %v699_v48 = vadd.f32 %v1944_v34, %v698_v46 }
  0xbd   :  { %v1101_v49 = vmax.f32 %v932_v44, 0.0 }
  0xbe   :  { %v1204_v50 = vadd.f32 %v1203_v33, %v1067_v47  ;;  %v1008_v51 = vmax.f32 %v699_v48, 0.0 }
  0xbf   :  { %v1243_v52 = vadd.f32 %v1242_v38, %v1101_v49 }
  0xc0   :  { %v1135_v54 = vadd.f32 %v1134_v39, %v1008_v51 }
  0xc1   :  { %v848_v55 = vpop.f32.mrf.mxu2 }
  0xc2   :  { %v849_v57 = vadd.f32 %v1944_v34, %v848_v55  ;;  %v933_v58 = vpop.f32.mrf.mxu3  ;;  %v2073_v56 = vpop.f32.mrf.mxu1 }
  0xc3   :  { %v934_v62 = vadd.f32 %v1944_v34, %v933_v58  ;;  %v701_v63 = vpop.f32.mrf.mxu0  ;;  %v1711_v58 = vld [vmem:[%s2389_s0 + $0xd0] sm:$0xff] }
  0xc4   :  { %v1068_v1 = vmax.f32 %v849_v57, 0.0  ;;  %v702_v2 = vadd.f32 %v1944_v34, %v701_v63  ;;  %v1729_v63 = vld [vmem:[%s2389_s0 + $0x160] sm:$0xff] }
  0xc5   :  { %v1102_v3 = vmax.f32 %v934_v62, 0.0  ;;  %v1699_v62 = vld [vmem:[%s2389_s0 + $0x70] sm:$0xff] }
  0xc6   :  { %v1205_v4 = vadd.f32 %v1204_v50, %v1068_v1  ;;  %v1009_v5 = vmax.f32 %v702_v2, 0.0  ;;  %1633 = vmatmul.msk.bf16.gmra.mxu0 %vm475_vm1, %v1697_v59  ;;  %1663 = vmatmul.msk.bf16.gmra.mxu2 %vm475_vm1, %v1727_v61  ;;  %v1746_v2 = vld [vmem:[%s2389_s0 + $0x1e8] sm:$0xff] }
  0xc7   :  { %v1244_v6 = vadd.f32 %v1243_v52, %v1102_v3  ;;  %1680 = vmatmul.msk.bf16.gmra.mxu3 %vm475_vm1, %v1744_v0  ;;  %1647 = vmatmul.msk.bf16.gmra.mxu1 %vm475_vm1, %v1711_v58 }
  0xc8   :  { %v1136_v7 = vadd.f32 %v1135_v54, %v1009_v5 }
  0xc9   :  { %v851_v8 = vpop.f32.mrf.mxu2 }
  0xca   :  { %v852_v9 = vadd.f32 %v1944_v34, %v851_v8  ;;  %v936_v10 = vpop.f32.mrf.mxu3 }
  0xcb   :  { %v937_v11 = vadd.f32 %v1944_v34, %v936_v10  ;;  %v703_v12 = vpop.f32.mrf.mxu0  ;;  %v2094_v10 = vpop.f32.mrf.mxu1 }
  0xcc   :  { %v1069_v13 = vmax.f32 %v852_v9, 0.0  ;;  %v704_v14 = vadd.f32 %v1944_v34, %v703_v12 }
  0xcd   :  { %v1103_v15 = vmax.f32 %v937_v11, 0.0 }
  0xce   :  { %v1206_v16 = vadd.f32 %v1205_v4, %v1069_v13  ;;  %v1010_v17 = vmax.f32 %v704_v14, 0.0 }
  0xcf   :  { %v1245_v18 = vadd.f32 %v1244_v6, %v1103_v15 }
  0xd0   :  { %v1137_v19 = vadd.f32 %v1136_v7, %v1010_v17 }
  0xd1   :  { %v853_v21 = vpop.f32.mrf.mxu2 }
  0xd2   :  { %v854_v23 = vadd.f32 %v1944_v34, %v853_v21  ;;  %v938_v24 = vpop.f32.mrf.mxu3 }
  0xd3   :  { %v939_v27 = vadd.f32 %v1944_v34, %v938_v24  ;;  %v706_v28 = vpop.f32.mrf.mxu0  ;;  %v2099_v24 = vpop.f32.mrf.mxu1 }
  0xd4   :  { %v1070_v30 = vmax.f32 %v854_v23, 0.0  ;;  %v707_v31 = vadd.f32 %v1944_v34, %v706_v28 }
  0xd5   :  { %v1104_v32 = vmax.f32 %v939_v27, 0.0 }
  0xd6   :  { %v1207_v33 = vadd.f32 %v1206_v16, %v1070_v30  ;;  %v1011_v36 = vmax.f32 %v707_v31, 0.0  ;;  %1634 = vmatmul.msk.bf16.gmra.mxu0 %vm475_vm1, %v1698_v25  ;;  %1664 = vmatmul.msk.bf16.gmra.mxu2 %vm475_vm1, %v1728_v26  ;;  %v1712_v26 = vld [vmem:[%s2389_s0 + $0xd8] sm:$0xff]  ;;  %v1730_v30 = vld [vmem:[%s2389_s0 + $0x168] sm:$0xff] }
  0xd7   :  { %v1246_v38 = vadd.f32 %v1245_v18, %v1104_v32  ;;  %1681 = vmatmul.msk.bf16.gmra.mxu3 %vm475_vm1, %v1745_v29  ;;  %v1700_v29 = vld [vmem:[%s2389_s0 + $0x78] sm:$0xff]  ;;  %1648 = vmatmul.msk.bf16.gmra.mxu1 %vm475_vm1, %v1712_v26 }
  0xd8   :  { %v1138_v39 = vadd.f32 %v1137_v19, %v1011_v36 }
  0xd9   :  { %v856_v41 = vpop.f32.mrf.mxu2 }
  0xda   :  { %v857_v42 = vadd.f32 %v1944_v34, %v856_v41  ;;  %v941_v44 = vpop.f32.mrf.mxu3 }
  0xdb   :  { %v942_v46 = vadd.f32 %v1944_v34, %v941_v44  ;;  %v708_v47 = vpop.f32.mrf.mxu0 }
  0xdc   :  { %v1071_v48 = vmax.f32 %v857_v42, 0.0  ;;  %v709_v49 = vadd.f32 %v1944_v34, %v708_v47 }
  0xdd   :  { %v1105_v50 = vmax.f32 %v942_v46, 0.0  ;;  %v1323_v46 = vld [vmem:[%s2392_s3 + $0x78] sm:$0xff] }
  0xde   :  { %v1208_v51 = vadd.f32 %v1207_v33, %v1071_v48  ;;  %v1012_v52 = vmax.f32 %v709_v49, 0.0  ;;  %v1747_v33 = vld [vmem:[%s2389_s0 + $0x1f0] sm:$0xff]  ;;  %1328 = vmatpush.msrb.mxu1 %v1323_v46  ;;  %v2123_v48 = vpop.f32.mrf.mxu1 }
  0xdf   :  { %v1247_v54 = vadd.f32 %v1246_v38, %v1105_v50 }
  0xe0   :  { %v1139_v55 = vadd.f32 %v1138_v39, %v1012_v52 }
  0xe1   :  { %v858_v57 = vpop.f32.mrf.mxu2 }
  0xe2   :  { %v859_v59 = vadd.f32 %v1944_v34, %v858_v57  ;;  %v943_v61 = vpop.f32.mrf.mxu3 }
  0xe3   :  { %v944_v0 = vadd.f32 %v1944_v34, %v943_v61  ;;  %v711_v1 = vpop.f32.mrf.mxu0 }
  0xe4   :  { %v1072_v3 = vmax.f32 %v859_v59, 0.0  ;;  %v712_v4 = vadd.f32 %v1944_v34, %v711_v1  ;;  %v1322_v1 = vld [vmem:[%s2392_s3 + $0x70] sm:$0xff] }
  0xe5   :  { %v1106_v5 = vmax.f32 %v944_v0, 0.0  ;;  %1329 = vmatpush.msrb.mxu1 %v1322_v1 }
  0xe6   :  { %v1209_v6 = vadd.f32 %v1208_v51, %v1072_v3  ;;  %v1013_v7 = vmax.f32 %v712_v4, 0.0  ;;  %1635 = vmatmul.msk.bf16.gmra.mxu0 %vm475_vm1, %v1699_v62  ;;  %1665 = vmatmul.msk.bf16.gmra.mxu2 %vm475_vm1, %v1729_v63  ;;  %v2128_v0 = vpop.f32.mrf.mxu1  ;;  %v1713_v3 = vld [vmem:[%s2389_s0 + $0xe0] sm:$0xff] }
  0xe7   :  { %v1248_v8 = vadd.f32 %v1247_v54, %v1106_v5  ;;  %1682 = vmatmul.msk.bf16.gmra.mxu3 %vm475_vm1, %v1746_v2  ;;  %1649 = vmatmul.msk.bf16.gmra.mxu1 %vm475_vm1, %v1713_v3 }
  0xe8   :  { %v1140_v9 = vadd.f32 %v1139_v55, %v1013_v7  ;;  %v1731_v7 = vld [vmem:[%s2389_s0 + $0x170] sm:$0xff] }
  0xe9   :  { %v861_v11 = vpop.f32.mrf.mxu2 }
  0xea   :  { %v862_v12 = vadd.f32 %v1944_v34, %v861_v11  ;;  %v946_v13 = vpop.f32.mrf.mxu3  ;;  %v1748_v11 = vld [vmem:[%s2389_s0 + $0x1f8] sm:$0xff] }
  0xeb   :  { %v947_v14 = vadd.f32 %v1944_v34, %v946_v13  ;;  %v713_v15 = vpop.f32.mrf.mxu0 }
  0xec   :  { %v1073_v16 = vmax.f32 %v862_v12, 0.0  ;;  %v714_v17 = vadd.f32 %v1944_v34, %v713_v15 }
  0xed   :  { %v1107_v18 = vmax.f32 %v947_v14, 0.0 }
  0xee   :  { %v1210_v19 = vadd.f32 %v1209_v6, %v1073_v16  ;;  %v1014_v21 = vmax.f32 %v714_v17, 0.0  ;;  %v1701_v6 = vld [vmem:[%s2389_s0 + $0x80] sm:$0xff] }
  0xef   :  { %v1249_v22 = vadd.f32 %v1248_v8, %v1107_v18 }
  0xf0   :  { %v1141_v23 = vadd.f32 %v1140_v9, %v1014_v21 }
  0xf1   :  { %v863_v25 = vpop.f32.mrf.mxu2 }
  0xf2   :  { %v864_v27 = vadd.f32 %v1944_v34, %v863_v25  ;;  %v948_v28 = vpop.f32.mrf.mxu3 }
  0xf3   :  { %v949_v31 = vadd.f32 %v1944_v34, %v948_v28  ;;  %v716_v32 = vpop.f32.mrf.mxu0 }
  0xf4   :  { %v1074_v36 = vmax.f32 %v864_v27, 0.0  ;;  %v717_v38 = vadd.f32 %v1944_v34, %v716_v32 }
  0xf5   :  { %v1108_v39 = vmax.f32 %v949_v31, 0.0 }
  0xf6   :  { %v1211_v41 = vadd.f32 %v1210_v19, %v1074_v36  ;;  %v1015_v42 = vmax.f32 %v717_v38, 0.0  ;;  %1636 = vmatmul.msk.bf16.gmra.mxu0 %vm475_vm1, %v1700_v29  ;;  %1666 = vmatmul.msk.bf16.gmra.mxu2 %vm475_vm1, %v1730_v30  ;;  %v2152_v19 = vpop.f32.mrf.mxu1  ;;  %v1321_v36 = vld [vmem:[%s2392_s3 + $0x68] sm:$0xff] }
  0xf7   :  { %v1250_v44 = vadd.f32 %v1249_v22, %v1108_v39  ;;  %1683 = vmatmul.msk.bf16.gmra.mxu3 %vm475_vm1, %v1747_v33  ;;  %1330 = vmatpush.msrb.mxu1 %v1321_v36 }
  0xf8   :  { %v1142_v47 = vadd.f32 %v1141_v23, %v1015_v42 }
  0xf9   :  { %v866_v49 = vpop.f32.mrf.mxu2 }
  0xfa   :  { %v867_v50 = vadd.f32 %v1944_v34, %v866_v49  ;;  %v951_v51 = vpop.f32.mrf.mxu3 }
  0xfb   :  { %v952_v52 = vadd.f32 %v1944_v34, %v951_v51  ;;  %v718_v54 = vpop.f32.mrf.mxu0 }
  0xfc   :  { %v1075_v55 = vmax.f32 %v867_v50, 0.0  ;;  %v719_v57 = vadd.f32 %v1944_v34, %v718_v54 }
  0xfd   :  { %v1109_v58 = vmax.f32 %v952_v52, 0.0 }
  0xfe   :  { %v1212_v59 = vadd.f32 %v1211_v41, %v1075_v55  ;;  %v1016_v61 = vmax.f32 %v719_v57, 0.0  ;;  %v2160_v39 = vpop.f32.mrf.mxu1  ;;  %v1714_v41 = vld [vmem:[%s2389_s0 + $0xe8] sm:$0xff] }
  0xff   :  { %v1251_v62 = vadd.f32 %v1250_v44, %v1109_v58  ;;  %1650 = vmatmul.msk.bf16.gmra.mxu1 %vm475_vm1, %v1714_v41 }
 0x100   :  { %v1143_v63 = vadd.f32 %v1142_v47, %v1016_v61 }
 0x101   :  { %v868_v2 = vpop.f32.mrf.mxu2 }
 0x102   :  { %v869_v4 = vadd.f32 %v1944_v34, %v868_v2  ;;  %v953_v5 = vpop.f32.mrf.mxu3 }
 0x103   :  { %v954_v8 = vadd.f32 %v1944_v34, %v953_v5  ;;  %v721_v9 = vpop.f32.mrf.mxu0 }
 0x104   :  { %v1076_v12 = vmax.f32 %v869_v4, 0.0  ;;  %v722_v13 = vadd.f32 %v1944_v34, %v721_v9 }
 0x105   :  { %v1110_v14 = vmax.f32 %v954_v8, 0.0  ;;  %v1320_v8 = vld [vmem:[%s2392_s3 + $0x60] sm:$0xff] }
 0x106   :  { %v1213_v15 = vadd.f32 %v1212_v59, %v1076_v12  ;;  %v1017_v16 = vmax.f32 %v722_v13, 0.0  ;;  %1637 = vmatmul.msk.bf16.gmra.mxu0 %vm475_vm1, %v1701_v6  ;;  %1667 = vmatmul.msk.bf16.gmra.mxu2 %vm475_vm1, %v1731_v7  ;;  %v2171_v1 = vpop.f32.mrf.mxu1 }
 0x107   :  { %v1252_v17 = vadd.f32 %v1251_v62, %v1110_v14  ;;  %1684 = vmatmul.msk.bf16.gmra.mxu3 %vm475_vm1, %v1748_v11  ;;  %1331 = vmatpush.msrb.mxu1 %v1320_v8 }
 0x108   :  { %v1144_v18 = vadd.f32 %v1143_v63, %v1017_v16 }
 0x109   :  { %v871_v21 = vpop.f32.mrf.mxu2 }
 0x10a   :  { %v872_v22 = vadd.f32 %v1944_v34, %v871_v21  ;;  %v956_v23 = vpop.f32.mrf.mxu3 }
 0x10b   :  { %v957_v25 = vadd.f32 %v1944_v34, %v956_v23  ;;  %v723_v26 = vpop.f32.mrf.mxu0 }
 0x10c   :  { %v1077_v27 = vmax.f32 %v872_v22, 0.0  ;;  %v724_v28 = vadd.f32 %v1944_v34, %v723_v26 }
 0x10d   :  { %v1111_v29 = vmax.f32 %v957_v25, 0.0 }
 0x10e   :  { %v1214_v30 = vadd.f32 %v1213_v15, %v1077_v27  ;;  %v1018_v31 = vmax.f32 %v724_v28, 0.0  ;;  %v2180_v21 = vpop.f32.mrf.mxu1  ;;  %v1319_v27 = vld [vmem:[%s2392_s3 + $0x58] sm:$0xff] }
 0x10f   :  { %v1253_v32 = vadd.f32 %v1252_v17, %v1111_v29  ;;  %1332 = vmatpush.msrb.mxu1 %v1319_v27 }
 0x110   :  { %v1145_v33 = vadd.f32 %v1144_v18, %v1018_v31 }
 0x111   :  { %v873_v38 = vpop.f32.mrf.mxu2 }
 0x112   :  { %v874_v42 = vadd.f32 %v1944_v34, %v873_v38  ;;  %v958_v44 = vpop.f32.mrf.mxu3 }
 0x113   :  { %v959_v46 = vadd.f32 %v1944_v34, %v958_v44  ;;  %v726_v47 = vpop.f32.mrf.mxu0 }
 0x114   :  { %v1078_v49 = vmax.f32 %v874_v42, 0.0  ;;  %v727_v50 = vadd.f32 %v1944_v34, %v726_v47 }
 0x115   :  { %v1112_v51 = vmax.f32 %v959_v46, 0.0 }
 0x116   :  { %v1215_v52 = vadd.f32 %v1214_v30, %v1078_v49  ;;  %v1019_v54 = vmax.f32 %v727_v50, 0.0  ;;  %v2188_v46 = vpop.f32.mrf.mxu1 }
 0x117   :  { %v1254_v55 = vadd.f32 %v1253_v32, %v1112_v51 }
 0x118   :  { %v1146_v57 = vadd.f32 %v1145_v33, %v1019_v54 }
 0x119   :  { %v876_v58 = vpop.f32.mrf.mxu2 }
 0x11a   :  { %v877_v59 = vadd.f32 %v1944_v34, %v876_v58  ;;  %v961_v61 = vpop.f32.mrf.mxu3 }
 0x11b   :  { %v962_v62 = vadd.f32 %v1944_v34, %v961_v61  ;;  %v728_v63 = vpop.f32.mrf.mxu0 }
 0x11c   :  { %v1079_v2 = vmax.f32 %v877_v59, 0.0  ;;  %v729_v3 = vadd.f32 %v1944_v34, %v728_v63 }
 0x11d   :  { %v1113_v4 = vmax.f32 %v962_v62, 0.0 }
 0x11e   :  { %v1216_v5 = vadd.f32 %v1215_v52, %v1079_v2  ;;  %v1020_v6 = vmax.f32 %v729_v3, 0.0  ;;  %v1318_v2 = vld [vmem:[%s2392_s3 + $0x50] sm:$0xff] }
 0x11f   :  { %v1255_v7 = vadd.f32 %v1254_v55, %v1113_v4  ;;  %v2196_v4 = vpop.f32.mrf.mxu1  ;;  %1333 = vmatpush.msrb.mxu1 %v1318_v2 }
 0x120   :  { %v1147_v9 = vadd.f32 %v1146_v57, %v1020_v6 }
 0x121   :  { %v878_v11 = vpop.f32.mrf.mxu2 }
 0x122   :  { %v879_v12 = vadd.f32 %v1944_v34, %v878_v11  ;;  %v963_v13 = vpop.f32.mrf.mxu3 }
 0x123   :  { %v964_v14 = vadd.f32 %v1944_v34, %v963_v13  ;;  %v731_v15 = vpop.f32.mrf.mxu0 }
 0x124   :  { %v1080_v16 = vmax.f32 %v879_v12, 0.0  ;;  %v732_v17 = vadd.f32 %v1944_v34, %v731_v15 }
 0x125   :  { %v1114_v18 = vmax.f32 %v964_v14, 0.0 }
 0x126   :  { %v1217_v22 = vadd.f32 %v1216_v5, %v1080_v16  ;;  %v1021_v23 = vmax.f32 %v732_v17, 0.0  ;;  %v1317_v17 = vld [vmem:[%s2392_s3 + $0x48] sm:$0xff] }
 0x127   :  { %v1256_v25 = vadd.f32 %v1255_v7, %v1114_v18  ;;  %1334 = vmatpush.msrb.mxu1 %v1317_v17 }
 0x128   :  { %v1148_v26 = vadd.f32 %v1147_v9, %v1021_v23 }
 0x129   :  { %v881_v28 = vpop.f32.mrf.mxu2 }
 0x12a   :  { %v882_v29 = vadd.f32 %v1944_v34, %v881_v28  ;;  %v966_v30 = vpop.f32.mrf.mxu3 }
 0x12b   :  { %v967_v31 = vadd.f32 %v1944_v34, %v966_v30  ;;  %v733_v32 = vpop.f32.mrf.mxu0 }
 0x12c   :  { %v1081_v33 = vmax.f32 %v882_v29, 0.0  ;;  %v734_v36 = vadd.f32 %v1944_v34, %v733_v32 }
 0x12d   :  { %v1115_v38 = vmax.f32 %v967_v31, 0.0 }
 0x12e   :  { %v1218_v41 = vadd.f32 %v1217_v22, %v1081_v33  ;;  %v1022_v42 = vmax.f32 %v734_v36, 0.0 }
 0x12f   :  { %v1257_v44 = vadd.f32 %v1256_v25, %v1115_v38  ;;  %v2208_v25 = vpop.f32.mrf.mxu1 }
 0x130   :  { %v1149_v47 = vadd.f32 %v1148_v26, %v1022_v42 }
 0x131   :  { %v883_v49 = vpop.f32.mrf.mxu2 }
 0x132   :  { %v884_v50 = vadd.f32 %v1944_v34, %v883_v49  ;;  %v968_v51 = vpop.f32.mrf.mxu3 }
 0x133   :  { %v969_v52 = vadd.f32 %v1944_v34, %v968_v51  ;;  %v736_v54 = vpop.f32.mrf.mxu0 }
 0x134   :  { %v1082_v55 = vmax.f32 %v884_v50, 0.0  ;;  %v737_v57 = vadd.f32 %v1944_v34, %v736_v54 }
 0x135   :  { %v1116_v58 = vmax.f32 %v969_v52, 0.0 }
 0x136   :  { %v1219_v59 = vadd.f32 %v1218_v41, %v1082_v55  ;;  %v1023_v61 = vmax.f32 %v737_v57, 0.0  ;;  %v1316_v41 = vld [vmem:[%s2392_s3 + $0x40] sm:$0xff] }
 0x137   :  { %v1258_v62 = vadd.f32 %v1257_v44, %v1116_v58  ;;  %v2212_v33 = vpop.f32.mrf.mxu1  ;;  %1335 = vmatpush.msrb.mxu1 %v1316_v41 }
 0x138   :  { %v1150_v63 = vadd.f32 %v1149_v47, %v1023_v61  ;;  %v1315_v61 = vld [vmem:[%s2392_s3 + $0x38] sm:$0xff] }
 0x139   :  { %v886_v3 = vpop.f32.mrf.mxu2  ;;  %1336 = vmatpush.msrb.mxu1 %v1315_v61 }
 0x13a   :  { %v887_v5 = vadd.f32 %v1944_v34, %v886_v3  ;;  %v971_v6 = vpop.f32.mrf.mxu3 }
 0x13b   :  { %v972_v7 = vadd.f32 %v1944_v34, %v971_v6  ;;  %v738_v8 = vpop.f32.mrf.mxu0 }
 0x13c   :  { %v1083_v9 = vmax.f32 %v887_v5, 0.0  ;;  %v739_v11 = vadd.f32 %v1944_v34, %v738_v8 }
 0x13d   :  { %v1117_v12 = vmax.f32 %v972_v7, 0.0 }
 0x13e   :  { %v2201_v13 = vadd.f32 %v1219_v59, %v1083_v9  ;;  %v1024_v14 = vmax.f32 %v739_v11, 0.0 }
 0x13f   :  { %v2203_v15 = vadd.f32 %v1258_v62, %v1117_v12  ;;  %v2218_v51 = vpop.f32.mrf.mxu1 }
 0x140   :  { %v1151_v16 = vadd.f32 %v1150_v63, %v1024_v14 }
 0x141   :  { %v888_v18 = vpop.f32.mrf.mxu2 }
 0x142   :  { %v973_v22 = vpop.f32.mrf.mxu3 }
 0x143   :  { %v741_v23 = vpop.f32.mrf.mxu0 }
 0x144   :  { %v742_v26 = vadd.f32 %v1944_v34, %v741_v23  ;;  %v1314_v23 = vld [vmem:[%s2392_s3 + $0x30] sm:$0xff] }
 0x145   :  { %1337 = vmatpush.msrb.mxu1 %v1314_v23 }
 0x146   :  { %v1025_v27 = vmax.f32 %v742_v26, 0.0 }
 0x147   :  { %v2224_v2 = vpop.f32.mrf.mxu1 }
 0x148   :  { %v1152_v28 = vadd.f32 %v1151_v16, %v1025_v27 }
 0x149   :  { %v891_v29 = vpop.f32.mrf.mxu2 }
 0x14a   :  { %v976_v30 = vpop.f32.mrf.mxu3 }
 0x14b   :  { %v743_v31 = vpop.f32.mrf.mxu0  ;;  %v977_v61 = vadd.f32 %v1944_v34, %v976_v30 }
 0x14c   :  { %v744_v32 = vadd.f32 %v1944_v34, %v743_v31 }
 0x14e   :  { %v1026_v36 = vmax.f32 %v744_v32, 0.0 }
 0x14f   :  { %v2227_v14 = vpop.f32.mrf.mxu1 }
 0x150   :  { %v1153_v38 = vadd.f32 %v1152_v28, %v1026_v36 }
 0x151   :  { %v893_v42 = vpop.f32.mrf.mxu2 }
 0x152   :  { %v978_v44 = vpop.f32.mrf.mxu3 }
 0x153   :  { %v746_v47 = vpop.f32.mrf.mxu0 }
 0x154   :  { %v747_v49 = vadd.f32 %v1944_v34, %v746_v47 }
 0x156   :  { %v1027_v50 = vmax.f32 %v747_v49, 0.0  ;;  %v889_v49 = vadd.f32 %v1944_v34, %v888_v18 }
 0x157   :  { %v2234_v36 = vpop.f32.mrf.mxu1 }
 0x158   :  { %v1154_v52 = vadd.f32 %v1153_v38, %v1027_v50 }
 0x159   :  { %v896_v54 = vpop.f32.mrf.mxu2 }
 0x15a   :  { %v981_v55 = vpop.f32.mrf.mxu3 }
 0x15b   :  { %v748_v57 = vpop.f32.mrf.mxu0 }
 0x15c   :  { %v749_v58 = vadd.f32 %v1944_v34, %v748_v57 }
 0x15e   :  { %v1028_v59 = vmax.f32 %v749_v58, 0.0  ;;  %v892_v58 = vadd.f32 %v1944_v34, %v891_v29  ;;  %v982_v29 = vadd.f32 %v1944_v34, %v981_v55 }
 0x160   :  { %v1155_v62 = vadd.f32 %v1154_v52, %v1028_v59  ;;  %v974_v52 = vadd.f32 %v1944_v34, %v973_v22  ;;  %v1085_v18 = vmax.f32 %v892_v58, 0.0  ;;  %v1121_v58 = vmax.f32 %v982_v29, 0.0 }
 0x161   :  { %v898_v63 = vpop.f32.mrf.mxu2 }
 0x162   :  { %v983_v3 = vpop.f32.mrf.mxu3 }
 0x163   :  { %v751_v5 = vpop.f32.mrf.mxu0 }
 0x164   :  { %v752_v6 = vadd.f32 %v1944_v34, %v751_v5  ;;  %v894_v5 = vadd.f32 %v1944_v34, %v893_v42  ;;  %v899_v42 = vadd.f32 %v1944_v34, %v898_v63 }
 0x166   :  { %v1029_v7 = vmax.f32 %v752_v6, 0.0 }
 0x168   :  { %v1156_v8 = vadd.f32 %v1155_v62, %v1029_v7  ;;  %v1084_v62 = vmax.f32 %v889_v49, 0.0  ;;  %v1118_v7 = vmax.f32 %v974_v52, 0.0 }
 0x169   :  { %v901_v9 = vpop.f32.mrf.mxu2 }
 0x16a   :  { %v986_v11 = vpop.f32.mrf.mxu3  ;;  %v1221_v30 = vadd.f32 %v2201_v13, %v1084_v62  ;;  %v1088_v13 = vmax.f32 %v899_v42, 0.0 }
 0x16b   :  { %v753_v12 = vpop.f32.mrf.mxu0  ;;  %v987_v55 = vadd.f32 %v1944_v34, %v986_v11 }
 0x16c   :  { %v754_v16 = vadd.f32 %v1944_v34, %v753_v12  ;;  %v2243_v12 = vpop.f32.mrf.mxu1  ;;  %v1222_v52 = vadd.f32 %v1221_v30, %v1085_v18 }
 0x16e   :  { %v1030_v17 = vmax.f32 %v754_v16, 0.0  ;;  %v897_v16 = vadd.f32 %v1944_v34, %v896_v54 }
 0x170   :  { %v1157_v26 = vadd.f32 %v1156_v8, %v1030_v17  ;;  %v979_v8 = vadd.f32 %v1944_v34, %v978_v44  ;;  %v1119_v17 = vmax.f32 %v977_v61, 0.0  ;;  %v1087_v54 = vmax.f32 %v897_v16, 0.0 }
 0x171   :  { %v903_v27 = vpop.f32.mrf.mxu2 }
 0x172   :  { %v988_v28 = vpop.f32.mrf.mxu3  ;;  %v1120_v44 = vmax.f32 %v979_v8, 0.0  ;;  %v904_v61 = vadd.f32 %v1944_v34, %v903_v27  ;;  %v1123_v8 = vmax.f32 %v987_v55, 0.0 }
 0x173   :  { %v756_v31 = vpop.f32.mrf.mxu0 }
 0x174   :  { %v757_v32 = vadd.f32 %v1944_v34, %v756_v31  ;;  %v2261_v16 = vpop.f32.mrf.mxu1  ;;  %v1090_v27 = vmax.f32 %v904_v61, 0.0 }
 0x176   :  { %v1031_v38 = vmax.f32 %v757_v32, 0.0  ;;  %v1260_v32 = vadd.f32 %v2203_v15, %v1118_v7  ;;  %v989_v15 = vadd.f32 %v1944_v34, %v988_v28 }
 0x178   :  { %v1158_v41 = vadd.f32 %v1157_v26, %v1031_v38  ;;  %v1086_v26 = vmax.f32 %v894_v5, 0.0  ;;  %v984_v38 = vadd.f32 %v1944_v34, %v983_v3  ;;  %v767_v3 = vadd.f32 %v1944_v34, %v2047_v20 }
 0x179   :  { %v906_v47 = vpop.f32.mrf.mxu2  ;;  %v769_v20 = vadd.f32 %v1944_v34, %v2068_v40  ;;  %v1124_v42 = vmax.f32 %v989_v15, 0.0 }
 0x17a   :  { %v991_v50 = vpop.f32.mrf.mxu3  ;;  %v1122_v62 = vmax.f32 %v984_v38, 0.0  ;;  %v907_v7 = vadd.f32 %v1944_v34, %v906_v47  ;;  %v1035_v61 = vmax.f32 %v767_v3, 0.0  ;;  %v919_v3 = vadd.f32 %v1944_v34, %v1960_v45  ;;  %v2290_v45 = vld [vmem:[%s2391_s2] ss:$0 sm:$0xff] }
 0x17b   :  { %v758_v57 = vpop.f32.mrf.mxu0  ;;  %v992_v18 = vadd.f32 %v1944_v34, %v991_v50 }
 0x17c   :  { %v759_v59 = vadd.f32 %v1944_v34, %v758_v57  ;;  %v1261_v57 = vadd.f32 %v1260_v32, %v1119_v17  ;;  %v1091_v50 = vmax.f32 %v907_v7, 0.0 }
 0x17e   :  { %v1032_v6 = vmax.f32 %v759_v59, 0.0  ;;  %v1223_v59 = vadd.f32 %v1222_v52, %v1086_v26  ;;  %v1262_v63 = vadd.f32 %v1261_v57, %v1120_v44 }
 0x180   :  { %v2246_v22 = vadd.f32 %v1158_v41, %v1032_v6  ;;  %v902_v41 = vadd.f32 %v1944_v34, %v901_v9  ;;  %v1224_v5 = vadd.f32 %v1223_v59, %v1087_v54  ;;  %v1263_v9 = vadd.f32 %v1262_v63, %v1121_v58 }
 0x181   :  { %v908_v23 = vpop.f32.mrf.mxu2 }
 0x182   :  { %v993_v31 = vpop.f32.mrf.mxu3  ;;  %v1089_v6 = vmax.f32 %v902_v41, 0.0  ;;  %v1225_v17 = vadd.f32 %v1224_v5, %v1088_v13  ;;  %v909_v29 = vadd.f32 %v1944_v34, %v908_v23  ;;  %v1264_v26 = vadd.f32 %v1263_v9, %v1122_v62 }
 0x183   :  { %v761_v49 = vpop.f32.mrf.mxu0  ;;  %v994_v47 = vadd.f32 %v1944_v34, %v993_v31  ;;  %v1125_v41 = vmax.f32 %v992_v18, 0.0  ;;  %v1785_v23 = vmov 256.0   ;;  %v772_v31 = vadd.f32 %v1944_v34, %v2073_v56 }
 0x184   :  { %v762_v28 = vadd.f32 %v1944_v34, %v761_v49  ;;  %v1226_v44 = vadd.f32 %v1225_v17, %v1089_v6  ;;  %v1265_v54 = vadd.f32 %v1264_v26, %v1123_v8  ;;  %1756 = vrcp.f32 %v1785_v23 }
 0x185   :  { %v1092_v58 = vmax.f32 %v909_v29, 0.0  ;;  %v1126_v13 = vmax.f32 %v994_v47, 0.0  ;;  %v917_v5 = vadd.f32 %v1944_v34, %v1952_v37  ;;  %v1036_v6 = vmax.f32 %v769_v20, 0.0  ;;  %v2283_v20 = vpop.f32.mrf.mxu1 }
 0x186   :  { %v1227_v57 = vadd.f32 %v1226_v44, %v1090_v27  ;;  %v1033_v40 = vmax.f32 %v762_v28, 0.0  ;;  %v1266_v59 = vadd.f32 %v1265_v54, %v1124_v42  ;;  %v774_v18 = vadd.f32 %v1944_v34, %v2094_v10 }
 0x187   :  { %v1037_v28 = vmax.f32 %v772_v31, 0.0  ;;  %v777_v26 = vadd.f32 %v1944_v34, %v2099_v24  ;;  %v1096_v23 = vmax.f32 %v919_v3, 0.0 }
 0x188   :  { %v1228_v63 = vadd.f32 %v1227_v57, %v1091_v50  ;;  %v1267_v7 = vadd.f32 %v1266_v59, %v1125_v41  ;;  %v782_v57 = vadd.f32 %v2290_v45, %v2128_v0  ;;  %v784_v59 = vadd.f32 %v2290_v45, %v2152_v19 }
 0x189   :  { %v911_v11 = vpop.f32.mrf.mxu2  ;;  %v787_v0 = vadd.f32 %v2290_v45, %v2160_v39  ;;  %v789_v19 = vadd.f32 %v2290_v45, %v2171_v1  ;;  %v1311_v1 = vld [vmem:[%s2392_s3 + $0x18] sm:$0xff] }
 0x18a   :  { %v996_v30 = vpop.f32.mrf.mxu3  ;;  %v912_v38 = vadd.f32 %v1944_v34, %v911_v11  ;;  %v1229_v11 = vadd.f32 %v1228_v63, %v1092_v58  ;;  %v2278_v29 = vpop.eup %1756 }
 0x18b   :  { %v763_v32 = vpop.f32.mrf.mxu0  ;;  %v997_v49 = vadd.f32 %v1944_v34, %v996_v30  ;;  %v1268_v30 = vadd.f32 %v1267_v7, %v1126_v13  ;;  %v1043_v3 = vmax.f32 %v787_v0, 0.0  ;;  %vm1282_vm2 = vweird.f32 %v2278_v29 }
 0x18c   :  { %v764_v52 = vadd.f32 %v1944_v34, %v763_v32  ;;  %v1093_v62 = vmax.f32 %v912_v38, 0.0  ;;  %v1095_v32 = vmax.f32 %v917_v5, 0.0  ;;  %v1038_v38 = vmax.f32 %v774_v18, 0.0 }
 0x18d   :  { %v1127_v9 = vmax.f32 %v997_v49, 0.0  ;;  %v1039_v49 = vmax.f32 %v777_v26, 0.0  ;;  %v1044_v26 = vmax.f32 %v789_v19, 0.0 }
 0x18e   :  { %v1034_v55 = vmax.f32 %v764_v52, 0.0  ;;  %v1230_v10 = vadd.f32 %v1229_v11, %v1093_v62  ;;  %v779_v52 = vadd.f32 %v2290_v45, %v2123_v48  ;;  %v1313_v48 = vld [vmem:[%s2392_s3 + $0x28] sm:$0xff] }
 0x18f   :  { %v1269_v44 = vadd.f32 %v1268_v30, %v1127_v9  ;;  %1338 = vmatpush.msrb.mxu1 %v1313_v48  ;;  %v2304_v9 = vpop.f32.mrf.mxu1  ;;  %v809_v48 = vadd.f32 %v2290_v45, %v2227_v14  ;;  %v819_v14 = vadd.f32 %v2290_v45, %v2283_v20 }
 0x190   :  { %v1166_v15 = vadd.f32 %v1034_v55, %v1033_v40  ;;  %v1040_v31 = vmax.f32 %v779_v52, 0.0 }
 0x191   :  { %v913_v8 = vpop.f32.mrf.mxu2 }
 0x192   :  { %v1167_v17 = vadd.f32 %v1166_v15, %v1035_v61  ;;  %v914_v56 = vadd.f32 %v1944_v34, %v913_v8  ;;  %v998_v27 = vpop.f32.mrf.mxu3  ;;  %v1041_v15 = vmax.f32 %v782_v57, 0.0  ;;  %v1042_v8 = vmax.f32 %v784_v59, 0.0 }
 0x193   :  { %v999_v37 = vadd.f32 %v1944_v34, %v998_v27  ;;  %v1278_v34 = vmul.f32 256.0, %v2278_v29 }
 0x194   :  { %v1168_v42 = vadd.f32 %v1167_v17, %v1036_v6  ;;  %v1094_v47 = vmax.f32 %v914_v56, 0.0  ;;  %v1312_v17 = vld [vmem:[%s2392_s3 + $0x20] sm:$0xff]  ;;  %v792_v56 = vadd.f32 %v2290_v45, %v2180_v21 }
 0x195   :  { %v1128_v50 = vmax.f32 %v999_v37, 0.0  ;;  %v1279_v63 = vsub.f32 1.0, %v1278_v34  ;;  %1339 = vmatpush.msrb.mxu1 %v1312_v17  ;;  %v1309_v17 = vld [vmem:[%s2392_s3 + $0x8] sm:$0xff] }
 0x196   :  { %v1169_v54 = vadd.f32 %v1168_v42, %v1037_v28  ;;  %v1231_v41 = vadd.f32 %v1230_v10, %v1094_v47  ;;  %v794_v10 = vadd.f32 %v2290_v45, %v2188_v46  ;;  %v1045_v21 = vmax.f32 %v792_v56, 0.0 }
 0x197   :  { %v1270_v24 = vadd.f32 %v1269_v44, %v1128_v50  ;;  %v1280_v39 = vmul.f32 %v2278_v29, %v1279_v63  ;;  %1340 = vmatpush.msrb.mxu1 %v1311_v1 }
 0x198   :  { %v1170_v58 = vadd.f32 %v1169_v54, %v1038_v38  ;;  %v1232_v40 = vadd.f32 %v1231_v41, %v1095_v32  ;;  %v797_v32 = vadd.f32 %v2290_v45, %v2196_v4  ;;  %v1046_v54 = vmax.f32 %v794_v10, 0.0 }
 0x199   :  { %v1271_v55 = vrot.slane %v1270_v24, 4  ;;  %v1281_v44 = vadd.f32 %v2278_v29, %v1280_v39  ;;  %v799_v41 = vadd.f32 %v2290_v45, %v2208_v25  ;;  %v802_v4 = vadd.f32 %v2290_v45, %v2212_v33  ;;  %v1308_v39 = vld [vmem:[%s2392_s3] sm:$0xff] }
 0x19a   :  { %v1171_v13 = vadd.f32 %v1170_v58, %v1039_v49  ;;  %v1233_v61 = vadd.f32 %v1232_v40, %v1096_v23  ;;  %v1047_v46 = vmax.f32 %v797_v32, 0.0  ;;  %v823_v49 = vpop.f32.mrf.mxu1  ;;  %v804_v25 = vadd.f32 %v2290_v45, %v2218_v51 }
 0x19b   :  { %v1272_v62 = vadd.f32 %v1271_v55, %v1270_v24  ;;  %v2326_v24 = vsel %vm1282_vm2, %v2278_v29, %v1281_v44  ;;  %v1048_v55 = vmax.f32 %v799_v41, 0.0  ;;  %v1049_v59 = vmax.f32 %v802_v4, 0.0 }
 0x19c   :  { %v1172_v5 = vadd.f32 %v1171_v13, %v1040_v31  ;;  %v1234_v6 = vrot.slane %v1233_v61, 4  ;;  %v807_v13 = vadd.f32 %v2290_v45, %v2224_v2  ;;  %v817_v2 = vadd.f32 %v2290_v45, %v2261_v16 }
 0x19d   :  { %v1273_v7 = vrot.slane %v1272_v62, 2  ;;  %v822_v16 = vadd.f32 %v2290_v45, %v2304_v9  ;;  %v832_v9 = vadd.f32 %v2290_v45, %v1949_v35  ;;  %v834_v32 = vadd.f32 %v2290_v45, %v1955_v43 }
 0x19e   :  { %v1173_v18 = vadd.f32 %v1172_v5, %v1041_v15  ;;  %v1235_v11 = vadd.f32 %v1234_v6, %v1233_v61  ;;  %v1050_v61 = vmax.f32 %v804_v25, 0.0  ;;  %v812_v15 = vadd.f32 %v2290_v45, %v2234_v36  ;;  %v1310_v36 = vld [vmem:[%s2392_s3 + $0x10] sm:$0xff] }
 0x19f   :  { %v1274_v27 = vadd.f32 %v1273_v7, %v1272_v62  ;;  %v1051_v62 = vmax.f32 %v807_v13, 0.0  ;;  %v1052_v5 = vmax.f32 %v809_v48, 0.0  ;;  %v814_v6 = vadd.f32 %v2290_v45, %v2243_v12  ;;  %1341 = vmatpush.msrb.mxu1 %v1310_v36 }
 0x1a0   :  { %v1174_v28 = vadd.f32 %v1173_v18, %v1042_v8  ;;  %v1236_v30 = vrot.slane %v1235_v11, 2  ;;  %v1053_v8 = vmax.f32 %v812_v15, 0.0  ;;  %v1055_v12 = vmax.f32 %v817_v2, 0.0 }
 0x1a1   :  { %v1275_v37 = vrot.slane %v1274_v27, 1  ;;  %v1054_v18 = vmax.f32 %v814_v6, 0.0  ;;  %1342 = vmatpush.msrb.mxu1 %v1309_v17  ;;  %v1057_v1 = vmax.f32 %v822_v16, 0.0  ;;  %v1160_v44 = vrot.slane %v2246_v22, 4 }
 0x1a2   :  { %v1175_v42 = vadd.f32 %v1174_v28, %v1043_v3  ;;  %v1237_v47 = vadd.f32 %v1236_v30, %v1235_v11  ;;  %v826_v51 = vpop.f32.mrf.mxu1  ;;  %v824_v3 = vadd.f32 %v2290_v45, %v823_v49 }
 0x1a3   :  { %v1276_v52 = vadd.f32 %v1275_v37, %v1274_v27  ;;  %v1056_v27 = vmax.f32 %v819_v14, 0.0  ;;  %1343 = vmatpush.msrb.mxu1 %v1308_v39  ;;  %v827_v37 = vadd.f32 %v2290_v45, %v826_v51  ;;  %v1161_v35 = vadd.f32 %v1160_v44, %v2246_v22 }
 0x1a4   :  { %v1176_v50 = vadd.f32 %v1175_v42, %v1044_v26  ;;  %v1238_v38 = vrot.slane %v1237_v47, 1  ;;  %v1058_v10 = vmax.f32 %v824_v3, 0.0 }
 0x1a5   :  { %v2334_v40 = vmul.f32 %v2326_v24, %v1276_v52  ;;  %v1061_v52 = vmax.f32 %v832_v9, 0.0  ;;  %v1162_v43 = vrot.slane %v1161_v35, 2 }
 0x1a6   :  { %v1177_v23 = vadd.f32 %v1176_v50, %v1045_v21  ;;  %v1239_v34 = vadd.f32 %v1238_v38, %v1237_v47  ;;  %v1059_v21 = vmax.f32 %v827_v37, 0.0 }
 0x1a8   :  { %v1178_v57 = vadd.f32 %v1177_v23, %v1046_v54  ;;  %v2331_v58 = vmul.f32 %v2326_v24, %v1239_v34  ;;  %v837_v54 = vadd.f32 %v2290_v45, %v1976_v53  ;;  %v1062_v23 = vmax.f32 %v834_v32, 0.0 }
 0x1a9   :  { %v839_v34 = vadd.f32 %v2290_v45, %v1980_v60 }
 0x1aa   :  { %v1179_v31 = vadd.f32 %v1178_v57, %v1047_v46  ;;  %v1289_v29 = vmax.f32 %v2331_v58, %v2334_v40  ;;  %v828_v28 = vpop.f32.mrf.mxu1  ;;  %v1063_v49 = vmax.f32 %v837_v54, 0.0 }
 0x1ab   :  { %v829_v42 = vadd.f32 %v2290_v45, %v828_v28  ;;  %v1064_v57 = vmax.f32 %v839_v34, 0.0 }
 0x1ac   :  { %v1180_v33 = vadd.f32 %v1179_v31, %v1048_v55  ;;  %v1163_v31 = vadd.f32 %v1162_v43, %v1161_v35 }
 0x1ad   :  { %v1060_v38 = vmax.f32 %v829_v42, 0.0 }
 0x1ae   :  { %v1181_v63 = vadd.f32 %v1180_v33, %v1049_v59  ;;  %v1164_v33 = vrot.slane %v1163_v31, 1 }
 0x1b0   :  { %v1182_v0 = vadd.f32 %v1181_v63, %v1050_v61  ;;  %v1165_v48 = vadd.f32 %v1164_v33, %v1163_v31 }
 0x1b2   :  { %v1183_v7 = vadd.f32 %v1182_v0, %v1051_v62  ;;  %v1284_v60 = vmul.f32 %v2326_v24, %v1165_v48 }
 0x1b4   :  { %v1184_v19 = vadd.f32 %v1183_v7, %v1052_v5 }
 0x1b6   :  { %v1185_v11 = vadd.f32 %v1184_v19, %v1053_v8 }
 0x1b8   :  { %v1186_v56 = vadd.f32 %v1185_v11, %v1054_v18 }
 0x1ba   :  { %v1187_v20 = vadd.f32 %v1186_v56, %v1055_v12 }
 0x1bc   :  { %v1188_v30 = vadd.f32 %v1187_v20, %v1056_v27 }
 0x1be   :  { %v1189_v26 = vadd.f32 %v1188_v30, %v1057_v1 }
 0x1c0   :  { %v1190_v47 = vadd.f32 %v1189_v26, %v1058_v10 }
 0x1c2   :  { %v1191_v50 = vadd.f32 %v1190_v47, %v1059_v21 }
 0x1c4   :  { %v1192_v41 = vadd.f32 %v1191_v50, %v1060_v38 }
 0x1c6   :  { %v1193_v46 = vadd.f32 %v1192_v41, %v1061_v52 }
 0x1c8   :  { %v1194_v4 = vadd.f32 %v1193_v46, %v1062_v23 }
 0x1ca   :  { %v1195_v55 = vadd.f32 %v1194_v4, %v1063_v49 }
 0x1cc   :  { %v1196_v25 = vadd.f32 %v1195_v55, %v1064_v57 }
 0x1ce   :  { %v1197_v59 = vrot.slane %v1196_v25, 4 }
 0x1d0   :  { %v1198_v13 = vadd.f32 %v1197_v59, %v1196_v25 }
 0x1d2   :  { %v1199_v61 = vrot.slane %v1198_v13, 2 }
 0x1d4   :  { %v1200_v53 = vadd.f32 %v1199_v61, %v1198_v13 }
 0x1d6   :  { %v1201_v63 = vrot.slane %v1200_v53, 1 }
 0x1d8   :  { %v1202_v62 = vadd.f32 %v1201_v63, %v1200_v53 }
 0x1da   :  { %v1285_v22 = vmul.f32 %v2326_v24, %v1202_v62  ;;  %v1755_v24 = vld [vmem:[%s2393_s4] ss:$0 sm:$0xff] }
 0x1dc   :  { %v1288_v45 = vmax.f32 %v1284_v60, %v1285_v22  ;;  %v1297_v15 = vsel %vm1296_vm3, %v1285_v22, %v1284_v60 }
 0x1dd   :  { %v1299_v0 = vsel %vm1298_vm4, %v2331_v58, %v1297_v15 }
 0x1de   :  { %v1291_v51 = vsel %vm1290_vm5, %v1288_v45, %v1289_v29  ;;  %v1301_v5 = vsel %vm1300_vm6, %v2334_v40, %v1299_v0 }
 0x1df   :  { %v1304_v6 = vrot.slane %v1291_v51, 4 }
 0x1e1   :  { %v1307_v7 = vsel %vm1306_vm7, %v1301_v5, %v1304_v6 }
 0x1e2   :  { %1344 = vmatmul.f32.vlgmr.msrb.gmra.mxu1 %v1307_v7 }
 0x25f   :  { %v1345_v8 = vpop.f32.mrf.mxu1 }
 0x260   :  { %v1346_v2 = vadd.f32 %v1755_v24, %v1345_v8 }
 0x262   :  { %1348 = vst [vmem:[#allocation2] sm:$0x3f] %v1346_v2 }
 0x263   :  { %1359 = dma.vmem_to_hbm [thread:$0]  %s1355_s26, 128, %s1357_s29, [#allocation3]  }
 0x264   :  { %1783 = dma.done.wait [#allocation3], 128  }
 0x265   :  { %1784 = vsyncadd [#allocation3], 4294967168 }
 0x266   :  { %1364 = vsyncpa [#allocation3], 1 }

</bundles_post_ra>
